<compile_context>
chip_gen: v6e
topology: v6e:2x2x1
jax: 0.10.0
libtpu: 0.0.40
codegen_flags: <defaults>
</compile_context>

<pallas_src>
import jax
import jax.numpy as jnp
import numpy as np
from jax.experimental import pallas as pl
from jax.experimental.pallas import tpu as pltpu

# ----------------------------- problem sizes --------------------------------
B = 2
C_PROG = 22           # prognostic (output) channels -- must be >= 22 (indices 20/21 used)
N_UNPRED = 2          # unpredicted (forcing) channels appended by the preprocessor
N_STATIC = 2          # static channels appended after normalization (last one = mask)
C_NORM = C_PROG + N_UNPRED              # 24 normalized channels
C_TOT = C_NORM + N_STATIC               # 26 channels seen by the model
C_OUT = C_PROG                          # 22 channels produced by the model
H = W = 16
S = H * W             # 256 spatial pixels -> lane dim (multiple of 128)


# ------------------------------- kernel -------------------------------------
def _stepper_kernel(inp_ref, unp_ref, sta_ref, w_ref, prm_ref, y_ref):
    nb = inp_ref.shape[0]          # batches in this grid step (1 or B, static)
    c_prog = inp_ref.shape[1]
    n_unp = unp_ref.shape[1]
    n_sta = sta_ref.shape[1]
    c_out = y_ref.shape[1]

    # Hoisted parameter loads (shared across the unrolled batch loop).
    w = w_ref[...]                                   # (c_out, c_tot), out_scale folded in
    prm = prm_ref[...]                               # (c_prog + n_unp, 4) packed params
    ib_p, is_p = prm[:c_prog, 0:1], prm[:c_prog, 1:2]
    ib_u, is_u = prm[c_prog:, 0:1], prm[c_prog:, 1:2]
    b_fused = prm[:c_out, 2:3]                       # out_scale*b_model + out_bias
    ind = prm[:c_out, 3:4]                           # 1.0 at channels 20/21, else 0.0

    for lb in range(nb):                             # unrolled (nb is tiny and static)
        b = pl.program_id(0) * nb + lb               # global batch index
        gate = (b == 0).astype(jnp.float32)          # masked multiply only for batch 0

        # history_normalize: (x - bias) * (1/scale); static channels untouched.
        xp = (inp_ref[lb] - ib_p) * is_p             # (c_prog, S)
        xu = (unp_ref[lb] - ib_u) * is_u             # (n_unp, S)
        xs = sta_ref[lb]                             # (n_sta, S)

        mask = xs[n_sta - 1:n_sta, :]                # (1, S) == inpans[:, -1]
        # mult == mask on channels 20/21 of batch 0, 1.0 everywhere else.
        mult = 1.0 + (ind * gate) * (mask - 1.0)     # (c_out, S)

        xm = xp * mult                               # inpans[0, 20/21] *= mask
        z = jnp.concatenate([xm, xu, xs], axis=0)    # (c_tot, S) model-input tile

        # model (1x1 conv) + history_denormalize in a single MXU dot
        # (out_scale folded into w, out_scale*b + out_bias folded into b_fused).
        yn = jnp.dot(w, z, preferred_element_type=jnp.float32) + b_fused
        y_ref[lb] = (yn * mult).astype(y_ref.dtype)  # y[0, 20/21] *= mask


def _batch_block(bn):
    """Batches per grid step: 1 per step on multi-TC chips (v7x megacore split),
    all batches in one step on single-TC chips (v5e/v6e) to save per-step overhead."""
    try:
        kind = jax.devices()[0].device_kind.lower()
    except Exception:
        kind = ""
    if "v7" in kind and bn > 1:
        return 1
    return bn


def single_step_forward(inp, unpred, static, in_bias, in_scale,
                        out_scale, out_bias, w, b_model):
    """inp (B,C_PROG,H,W), unpred (B,N_UNPRED,H,W), static (B,N_STATIC,H,W) -> (B,C_OUT,H,W)."""
    bn, c_prog, hn, wn = inp.shape
    n_unp, n_sta = unpred.shape[1], static.shape[1]
    c_norm = c_prog + n_unp
    c_tot = c_norm + n_sta
    c_out = w.shape[1]
    s = hn * wn

    # Shape / assumption checks (channel-20/21 indicator reused for input and output side).
    assert unpred.shape == (bn, n_unp, hn, wn) and static.shape == (bn, n_sta, hn, wn)
    assert in_bias.shape == (c_norm,) and in_scale.shape == (c_norm,)
    assert w.shape == (c_tot, c_out) and b_model.shape == (c_out,)
    assert out_scale.shape == (c_out,) and out_bias.shape == (c_out,)
    assert c_out == c_prog and c_prog > 21, \
        "mask-channel indicator assumes output channels == prognostic channels and >= 22"

    # NCHW -> (B, C, S): pure reshapes, no transposes; S is the lane dim.
    inp_s = inp.reshape(bn, c_prog, s)
    unp_s = unpred.reshape(bn, n_unp, s)
    sta_s = static.reshape(bn, n_sta, s)

    # Fold the output affine into the model weights and pack the small per-channel
    # parameter vectors into a single (c_norm, 4) array -> 5 kernel inputs total.
    w_fused = (w * out_scale[None, :]).T                       # (c_out, c_tot)
    prm = jnp.zeros((c_norm, 4), jnp.float32)
    prm = prm.at[:, 0].set(in_bias)
    prm = prm.at[:, 1].set(1.0 / in_scale)
    prm = prm.at[:c_out, 2].set(b_model * out_scale + out_bias)
    prm = prm.at[20, 3].set(1.0).at[21, 3].set(1.0)

    bblk = _batch_block(bn)
    assert bn % bblk == 0
    grid = (bn // bblk,)

    cost = pl.CostEstimate(
        flops=2 * bn * c_out * c_tot * s,
        transcendentals=0,
        bytes_accessed=4 * (bn * c_tot * s + c_out * c_tot + c_norm * 4 + bn * c_out * s))

    y_flat = pl.pallas_call(
        _stepper_kernel,
        out_shape=jax.ShapeDtypeStruct((bn, c_out, s), jnp.float32),
        grid=grid,
        in_specs=[
            pl.BlockSpec((bblk, c_prog, s), lambda i: (i, 0, 0)),
            pl.BlockSpec((bblk, n_unp, s), lambda i: (i, 0, 0)),
            pl.BlockSpec((bblk, n_sta, s), lambda i: (i, 0, 0)),
            pl.BlockSpec((c_out, c_tot), lambda i: (0, 0)),
            pl.BlockSpec((c_norm, 4), lambda i: (0, 0)),
        ],
        out_specs=pl.BlockSpec((bblk, c_out, s), lambda i: (i, 0, 0)),
        compiler_params=pltpu.CompilerParams(dimension_semantics=("parallel",)),
        cost_estimate=cost,
    )(inp_s, unp_s, sta_s, w_fused, prm)

    return y_flat.reshape(bn, c_out, hn, wn)


# ------------------------- pure-JAX reference (NCHW) -------------------------
def reference_forward(inp, unpred, static, in_bias, in_scale,
                      out_scale, out_bias, w, b_model):
    inpa = jnp.concatenate([inp, unpred], axis=1)                          # (B, 24, H, W)
    inpan = (inpa - in_bias[None, :, None, None]) / in_scale[None, :, None, None]
    inpans = jnp.concatenate([inpan, static], axis=1)                      # (B, 26, H, W)
    mask = inpans[0, -1]
    inpans = inpans.at[0, 20].multiply(mask).at[0, 21].multiply(mask)
    yn = jnp.einsum('bchw,cd->bdhw', inpans, w) + b_model[None, :, None, None]
    y = yn * out_scale[None, :, None, None] + out_bias[None, :, None, None]
    y = y.at[0, 20].multiply(mask).at[0, 21].multiply(mask)
    return y


# ---------------------------------- main -------------------------------------
if __name__ == "__main__":
    key = jax.random.PRNGKey(0)
    ks = jax.random.split(key, 9)

    inp = jax.random.normal(ks[0], (B, C_PROG, H, W), jnp.float32)
    unpred = jax.random.normal(ks[1], (B, N_UNPRED, H, W), jnp.float32)
    static = jax.random.uniform(ks[2], (B, N_STATIC, H, W), jnp.float32,
                                minval=0.0, maxval=1.0)

    # Preprocessor normalization stats for the 24 normalized channels
    # (static channels are appended after normalization, untouched).
    in_bias = jax.random.normal(ks[3], (C_NORM,), jnp.float32) * 0.1
    in_scale = jax.random.uniform(ks[4], (C_NORM,), jnp.float32,
                                  minval=0.5, maxval=1.5)

    out_bias = jax.random.normal(ks[5], (C_OUT,), jnp.float32) * 0.1
    out_scale = jax.random.uniform(ks[6], (C_OUT,), jnp.float32,
                                   minval=0.5, maxval=1.5)

    # deterministic stand-in model: 1x1 conv (channel mixing) weights
    w = jax.random.normal(ks[7], (C_TOT, C_OUT), jnp.float32) / np.sqrt(C_TOT)
    b_model = jax.random.normal(ks[8], (C_OUT,), jnp.float32) * 0.01

    # TODO(synk): history_compute_stats with n_history>0 (per-sample running stats)
    # is not implemented; static per-channel normalization (makani default) is used.

    y = single_step_forward(inp, unpred, static, in_bias, in_scale,
                            out_scale, out_bias, w, b_model)
    y = jax.block_until_ready(y)

    y_ref = reference_forward(inp, unpred, static, in_bias, in_scale,
                              out_scale, out_bias, w, b_model)
    np.testing.assert_allclose(np.asarray(y), np.asarray(y_ref),
                               rtol=1e-3, atol=1e-3)

    print("KERNEL_OK")
</pallas_src>

<mosaic_0001>
module attributes {stable_mosaic.version = 11 : i64} {
  func.func @_stepper_kernel(%arg0: i32, %arg1: memref<2x22x256xf32, #tpu.memory_space<vmem>>, %arg2: memref<2x2x256xf32, #tpu.memory_space<vmem>>, %arg3: memref<2x2x256xf32, #tpu.memory_space<vmem>>, %arg4: memref<22x26xf32, #tpu.memory_space<vmem>>, %arg5: memref<24x4xf32, #tpu.memory_space<vmem>>, %arg6: memref<2x22x256xf32, #tpu.memory_space<vmem>>) attributes {dimension_semantics = [#tpu.dimension_semantics<parallel>], iteration_bounds = array<i64: 1>, scalar_prefetch = 0 : i64, scratch_operands = 0 : i64, tpu.core_type = #tpu.core_type<tc>, window_params = [{transform_indices = @transform_0, window_bounds = array<i64: 2, 22, 256>}, {transform_indices = @transform_1, window_bounds = array<i64: 2, 2, 256>}, {transform_indices = @transform_2, window_bounds = array<i64: 2, 2, 256>}, {pipeline_mode = #tpu.pipeline_mode<synchronous>, transform_indices = @transform_3, window_bounds = array<i64: 22, 26>}, {pipeline_mode = #tpu.pipeline_mode<synchronous>, transform_indices = @transform_4, window_bounds = array<i64: 24, 4>}, {transform_indices = @transform_5, window_bounds = array<i64: 2, 22, 256>}]} {
    %c0 = arith.constant 0 : index
    %c0_0 = arith.constant 0 : index
    %0 = vector.load %arg4[%c0, %c0_0] : memref<22x26xf32, #tpu.memory_space<vmem>>, vector<22x26xf32>
    %c0_1 = arith.constant 0 : index
    %c0_2 = arith.constant 0 : index
    %1 = vector.load %arg5[%c0_1, %c0_2] : memref<24x4xf32, #tpu.memory_space<vmem>>, vector<24x4xf32>
    %2 = vector.extract_strided_slice %1 {offsets = [0, 0], sizes = [22, 1], strides = [1, 1]} : vector<24x4xf32> to vector<22x1xf32>
    %3 = vector.extract_strided_slice %1 {offsets = [0, 1], sizes = [22, 1], strides = [1, 1]} : vector<24x4xf32> to vector<22x1xf32>
    %4 = vector.extract_strided_slice %1 {offsets = [22, 0], sizes = [2, 1], strides = [1, 1]} : vector<24x4xf32> to vector<2x1xf32>
    %5 = vector.extract_strided_slice %1 {offsets = [22, 1], sizes = [2, 1], strides = [1, 1]} : vector<24x4xf32> to vector<2x1xf32>
    %6 = vector.extract_strided_slice %1 {offsets = [0, 2], sizes = [22, 1], strides = [1, 1]} : vector<24x4xf32> to vector<22x1xf32>
    %7 = vector.extract_strided_slice %1 {offsets = [0, 3], sizes = [22, 1], strides = [1, 1]} : vector<24x4xf32> to vector<22x1xf32>
    %c2_i32 = arith.constant 2 : i32
    %8 = arith.muli %arg0, %c2_i32 : i32
    %c0_i32 = arith.constant 0 : i32
    %9 = arith.addi %8, %c0_i32 : i32
    %c0_i32_3 = arith.constant 0 : i32
    %10 = arith.cmpi eq, %9, %c0_i32_3 : i32
    %11 = arith.extui %10 : i1 to i32
    %12 = arith.sitofp %11 : i32 to f32
    %c0_4 = arith.constant 0 : index
    %c0_5 = arith.constant 0 : index
    %c0_6 = arith.constant 0 : index
    %13 = vector.load %arg1[%c0_4, %c0_5, %c0_6] : memref<2x22x256xf32, #tpu.memory_space<vmem>>, vector<1x22x256xf32>
    %14 = vector.shape_cast %13 : vector<1x22x256xf32> to vector<22x256xf32>
    %15 = vector.broadcast %2 : vector<22x1xf32> to vector<22x256xf32>
    %16 = arith.subf %14, %15 : vector<22x256xf32>
    %17 = vector.broadcast %3 : vector<22x1xf32> to vector<22x256xf32>
    %18 = arith.mulf %16, %17 : vector<22x256xf32>
    %c0_7 = arith.constant 0 : index
    %c0_8 = arith.constant 0 : index
    %c0_9 = arith.constant 0 : index
    %19 = vector.load %arg2[%c0_7, %c0_8, %c0_9] : memref<2x2x256xf32, #tpu.memory_space<vmem>>, vector<1x2x256xf32>
    %20 = vector.shape_cast %19 : vector<1x2x256xf32> to vector<2x256xf32>
    %21 = vector.broadcast %4 : vector<2x1xf32> to vector<2x256xf32>
    %22 = arith.subf %20, %21 : vector<2x256xf32>
    %23 = vector.broadcast %5 : vector<2x1xf32> to vector<2x256xf32>
    %24 = arith.mulf %22, %23 : vector<2x256xf32>
    %c0_10 = arith.constant 0 : index
    %c0_11 = arith.constant 0 : index
    %c0_12 = arith.constant 0 : index
    %25 = vector.load %arg3[%c0_10, %c0_11, %c0_12] : memref<2x2x256xf32, #tpu.memory_space<vmem>>, vector<1x2x256xf32>
    %26 = vector.shape_cast %25 : vector<1x2x256xf32> to vector<2x256xf32>
    %27 = vector.extract_strided_slice %26 {offsets = [1, 0], sizes = [1, 256], strides = [1, 1]} : vector<2x256xf32> to vector<1x256xf32>
    %28 = vector.broadcast %12 : f32 to vector<22x1xf32>
    %29 = arith.mulf %7, %28 : vector<22x1xf32>
    %cst = arith.constant 1.000000e+00 : f32
    %30 = vector.broadcast %cst : f32 to vector<1x256xf32>
    %31 = arith.subf %27, %30 : vector<1x256xf32>
    %32 = vector.broadcast %29 : vector<22x1xf32> to vector<22x256xf32>
    %33 = vector.broadcast %31 : vector<1x256xf32> to vector<22x256xf32>
    %34 = arith.mulf %32, %33 : vector<22x256xf32>
    %cst_13 = arith.constant 1.000000e+00 : f32
    %35 = vector.broadcast %cst_13 : f32 to vector<22x256xf32>
    %36 = arith.addf %35, %34 : vector<22x256xf32>
    %37 = arith.mulf %18, %36 : vector<22x256xf32>
    %38 = tpu.concatenate %37, %24, %26 in 0 : vector<22x256xf32>, vector<2x256xf32>, vector<2x256xf32> -> vector<26x256xf32>
    %cst_14 = arith.constant dense<0.000000e+00> : vector<22x256xf32>
    %39 = tpu.matmul %0, %38, %cst_14 {dimension_numbers = #tpu.dot_dimension_numbers<[1], [0], [0], [1], [0, 0, 1, 1], [], []>} : vector<22x26xf32>, vector<26x256xf32>, vector<22x256xf32> -> vector<22x256xf32>
    %40 = vector.broadcast %6 : vector<22x1xf32> to vector<22x256xf32>
    %41 = arith.addf %39, %40 : vector<22x256xf32>
    %42 = arith.mulf %41, %36 : vector<22x256xf32>
    %c0_15 = arith.constant 0 : index
    %c0_16 = arith.constant 0 : index
    %c0_17 = arith.constant 0 : index
    %43 = vector.load %arg6[%c0_15, %c0_16, %c0_17] : memref<2x22x256xf32, #tpu.memory_space<vmem>>, vector<1x22x256xf32>
    %44 = vector.shape_cast %43 : vector<1x22x256xf32> to vector<22x256xf32>
    %45 = vector.shape_cast %42 : vector<22x256xf32> to vector<1x22x256xf32>
    tpu.vector_store %arg6[%c0_15, %c0_16, %c0_17], %45 {strides = array<i32>} : memref<2x22x256xf32, #tpu.memory_space<vmem>>, vector<1x22x256xf32>,
    %c2_i32_18 = arith.constant 2 : i32
    %46 = arith.muli %arg0, %c2_i32_18 : i32
    %c1_i32 = arith.constant 1 : i32
    %47 = arith.addi %46, %c1_i32 : i32
    %c0_i32_19 = arith.constant 0 : i32
    %48 = arith.cmpi eq, %47, %c0_i32_19 : i32
    %49 = arith.extui %48 : i1 to i32
    %50 = arith.sitofp %49 : i32 to f32
    %c1 = arith.constant 1 : index
    %c0_20 = arith.constant 0 : index
    %c0_21 = arith.constant 0 : index
    %51 = vector.load %arg1[%c1, %c0_20, %c0_21] : memref<2x22x256xf32, #tpu.memory_space<vmem>>, vector<1x22x256xf32>
    %52 = vector.shape_cast %51 : vector<1x22x256xf32> to vector<22x256xf32>
    %53 = vector.broadcast %2 : vector<22x1xf32> to vector<22x256xf32>
    %54 = arith.subf %52, %53 : vector<22x256xf32>
    %55 = vector.broadcast %3 : vector<22x1xf32> to vector<22x256xf32>
    %56 = arith.mulf %54, %55 : vector<22x256xf32>
    %c1_22 = arith.constant 1 : index
    %c0_23 = arith.constant 0 : index
    %c0_24 = arith.constant 0 : index
    %57 = vector.load %arg2[%c1_22, %c0_23, %c0_24] : memref<2x2x256xf32, #tpu.memory_space<vmem>>, vector<1x2x256xf32>
    %58 = vector.shape_cast %57 : vector<1x2x256xf32> to vector<2x256xf32>
    %59 = vector.broadcast %4 : vector<2x1xf32> to vector<2x256xf32>
    %60 = arith.subf %58, %59 : vector<2x256xf32>
    %61 = vector.broadcast %5 : vector<2x1xf32> to vector<2x256xf32>
    %62 = arith.mulf %60, %61 : vector<2x256xf32>
    %c1_25 = arith.constant 1 : index
    %c0_26 = arith.constant 0 : index
    %c0_27 = arith.constant 0 : index
    %63 = vector.load %arg3[%c1_25, %c0_26, %c0_27] : memref<2x2x256xf32, #tpu.memory_space<vmem>>, vector<1x2x256xf32>
    %64 = vector.shape_cast %63 : vector<1x2x256xf32> to vector<2x256xf32>
    %65 = vector.extract_strided_slice %64 {offsets = [1, 0], sizes = [1, 256], strides = [1, 1]} : vector<2x256xf32> to vector<1x256xf32>
    %66 = vector.broadcast %50 : f32 to vector<22x1xf32>
    %67 = arith.mulf %7, %66 : vector<22x1xf32>
    %cst_28 = arith.constant 1.000000e+00 : f32
    %68 = vector.broadcast %cst_28 : f32 to vector<1x256xf32>
    %69 = arith.subf %65, %68 : vector<1x256xf32>
    %70 = vector.broadcast %67 : vector<22x1xf32> to vector<22x256xf32>
    %71 = vector.broadcast %69 : vector<1x256xf32> to vector<22x256xf32>
    %72 = arith.mulf %70, %71 : vector<22x256xf32>
    %cst_29 = arith.constant 1.000000e+00 : f32
    %73 = vector.broadcast %cst_29 : f32 to vector<22x256xf32>
    %74 = arith.addf %73, %72 : vector<22x256xf32>
    %75 = arith.mulf %56, %74 : vector<22x256xf32>
    %76 = tpu.concatenate %75, %62, %64 in 0 : vector<22x256xf32>, vector<2x256xf32>, vector<2x256xf32> -> vector<26x256xf32>
    %cst_30 = arith.constant dense<0.000000e+00> : vector<22x256xf32>
    %77 = tpu.matmul %0, %76, %cst_30 {dimension_numbers = #tpu.dot_dimension_numbers<[1], [0], [0], [1], [0, 0, 1, 1], [], []>} : vector<22x26xf32>, vector<26x256xf32>, vector<22x256xf32> -> vector<22x256xf32>
    %78 = vector.broadcast %6 : vector<22x1xf32> to vector<22x256xf32>
    %79 = arith.addf %77, %78 : vector<22x256xf32>
    %80 = arith.mulf %79, %74 : vector<22x256xf32>
    %c1_31 = arith.constant 1 : index
    %c0_32 = arith.constant 0 : index
    %c0_33 = arith.constant 0 : index
    %81 = vector.load %arg6[%c1_31, %c0_32, %c0_33] : memref<2x22x256xf32, #tpu.memory_space<vmem>>, vector<1x22x256xf32>
    %82 = vector.shape_cast %81 : vector<1x22x256xf32> to vector<22x256xf32>
    %83 = vector.shape_cast %80 : vector<22x256xf32> to vector<1x22x256xf32>
    tpu.vector_store %arg6[%c1_31, %c0_32, %c0_33], %83 {strides = array<i32>} : memref<2x22x256xf32, #tpu.memory_space<vmem>>, vector<1x22x256xf32>,
    return
  }
  func.func @transform_0(%arg0: i32) -> (i32, i32, i32) {
    %c0_i32 = arith.constant 0 : i32
    %c0_i32_0 = arith.constant 0 : i32
    %c0_i32_1 = arith.constant 0 : i32
    return %arg0, %c0_i32, %c0_i32_0 : i32, i32, i32
  }
  func.func @transform_1(%arg0: i32) -> (i32, i32, i32) {
    %c0_i32 = arith.constant 0 : i32
    %c0_i32_0 = arith.constant 0 : i32
    %c0_i32_1 = arith.constant 0 : i32
    return %arg0, %c0_i32, %c0_i32_0 : i32, i32, i32
  }
  func.func @transform_2(%arg0: i32) -> (i32, i32, i32) {
    %c0_i32 = arith.constant 0 : i32
    %c0_i32_0 = arith.constant 0 : i32
    %c0_i32_1 = arith.constant 0 : i32
    return %arg0, %c0_i32, %c0_i32_0 : i32, i32, i32
  }
  func.func @transform_3(%arg0: i32) -> (i32, i32) {
    %c0_i32 = arith.constant 0 : i32
    %c0_i32_0 = arith.constant 0 : i32
    %c0_i32_1 = arith.constant 0 : i32
    return %c0_i32, %c0_i32_0 : i32, i32
  }
  func.func @transform_4(%arg0: i32) -> (i32, i32) {
    %c0_i32 = arith.constant 0 : i32
    %c0_i32_0 = arith.constant 0 : i32
    %c0_i32_1 = arith.constant 0 : i32
    return %c0_i32, %c0_i32_0 : i32, i32
  }
  func.func @transform_5(%arg0: i32) -> (i32, i32, i32) {
    %c0_i32 = arith.constant 0 : i32
    %c0_i32_0 = arith.constant 0 : i32
    %c0_i32_1 = arith.constant 0 : i32
    return %arg0, %c0_i32, %c0_i32_0 : i32, i32, i32
  }
}

</mosaic_0001>

<bundles_post_ra>
// kernel: tpu_custom_call.1
= control target key start
LH: loop header
LB: loop body
LE: loop exit
PB: predicated region body
PF: predicated region fallthrough
CT: control target
= control target key end

     0   :  { %v79_v0 = vlaneseq  ;;  %v556_v1 = vmov 3   ;;  %v557_v2 = vmov 0   ;;  %v558_v11 = vmov 1   ;;  %s780_s4 = inlined_call_operand.vmem [shape: f32[24,4], index: 4, kind: input, shape index: {}]   ;;  %s781_s2 = inlined_call_operand.vmem [shape: f32[2,2,256], index: 2, kind: input, shape index: {}]   ;;  %s782_s0 = inlined_call_operand.vmem [shape: f32[2,22,256], index: 0, kind: input, shape index: {}]   ;;  %s783_s1 = inlined_call_operand.vmem [shape: f32[2,2,256], index: 1, kind: input, shape index: {}]   ;;  %s784_s3 = inlined_call_operand.vmem [shape: f32[22,26], index: 3, kind: input, shape index: {}]   ;;  %s785_s5 = inlined_call_operand.vmem [shape: f32[2,22,256], index: 5, kind: output, shape index: {}]  }
   0x1   :  { %546 = vset.pattern.permute.xlu1 %v556_v1  ;;  %544 = vset.pattern.permute.xlu0 %v557_v2  ;;  %v25_v3 = vld [vmem:[%s780_s4 + $0x10] sm:$0xff]  ;;  %v94_v6 = vld [vmem:[%s781_s2] sm:$0xf]  ;;  %v524_v10 = vld [vmem:[%s781_s2 + $0x4] sm:$0xf]  ;;  %vm198_vm0 = vcmask 1041408  }
   0x2   :  { %112 = vperm.xlu1 %546, %v25_v3   ;;  %48 = vperm.xlu0 %544, %v25_v3   ;;  %v330_v4 = vmul.f32 0.0, %v25_v3  ;;  %v597_v5 = vshrl.u32 %v79_v0, 7  ;;  %v511_v7 = vadd.f32 -1.0, %v94_v6  ;;  %v525_v14 = vadd.f32 -1.0, %v524_v10  ;;  %v24_v17 = vld [vmem:[%s780_s4 + $0x8] sm:$0xff]  ;;  %v23_v31 = vld [vmem:[%s780_s4] sm:$0xff] }
   0x3   :  { %v559_v15 = vmov 1983009808   ;;  %v329_v26 = vmul.f32 0.0, %v24_v17  ;;  %v328_v32 = vmul.f32 0.0, %v23_v31  ;;  %v560_v33 = vmov 0.0  }
   0x4   :  { %v118_v8 = vsub.s32 1, %v597_v5  ;;  %v122_v9 = vsub.s32 3, %v597_v5  ;;  %v155_v16 = vunpack.c.l.s4 %v559_v15  ;;  %267 = vmatprep.mubr.f32.mxu0 %v560_v33  ;;  %475 = vmatprep.mubr.f32.mxu1 %v560_v33  ;;  %v561_v34 = vmov 2   ;;  %v34_v41 = vld [vmem:[%s782_s0 + $0x20] sm:$0x3f] }
   0x5   :  { %v562_v35 = vmov 1987475062   ;;  %v35_v42 = vld [vmem:[%s782_s0 + $0x28] sm:$0x3f]  ;;  %v522_v43 = vld [vmem:[%s782_s0 + $0x58] sm:$0x3f] }
   0x6   :  { %545 = vset.pattern.permute.xlu0 %v558_v11  ;;  %344 = vperm.xlu1 %546, %v330_v4   ;;  %v119_v12 = vrot.slane %v511_v7, %v118_v8  ;;  %v123_v13 = vrot.slane %v511_v7, %v122_v9  ;;  %v351_v20 = vrot.slane %v525_v14, %v118_v8  ;;  %v156_v22 = vunpack.c.0.s8 %v155_v16  ;;  %v75_v44 = vld [vmem:[%s783_s1] sm:$0xf]  ;;  %v521_v45 = vld [vmem:[%s782_s0 + $0x50] sm:$0x3f]  ;;  %v523_v46 = vld [vmem:[%s783_s1 + $0x4] sm:$0xf] }
   0x7   :  { %66 = vperm.xlu0 %545, %v25_v3   ;;  %v355_v21 = vrot.slane %v525_v14, %v122_v9  ;;  %v77_v36 = vunpack.c.l.s4 %v562_v35  ;;  %v33_v9 = vld [vmem:[%s782_s0 + $0x18] sm:$0xff]  ;;  %vm173_vm1 = vcmask 1045504   ;;  %vm188_vm2 = vcmask 211968  }
   0x8   :  { %v610_v18 = vrot.slane %v119_v12, %v118_v8  ;;  %v612_v19 = vrot.slane %v123_v13, %v118_v8  ;;  %v614_v23 = vrot.slane %v351_v20, %v118_v8  ;;  %v620_v25 = vsub.s32 %v156_v22, %v597_v5  ;;  %v520_v12 = vld [vmem:[%s782_s0 + $0x48] sm:$0xff] }
   0x9   :  { %v616_v24 = vrot.slane %v355_v21, %v118_v8  ;;  %v78_v37 = vunpack.c.0.s8 %v77_v36  ;;  %v32_v8 = vld [vmem:[%s782_s0 + $0x10] sm:$0xff] }
   0xa   :  { %547 = vset.pattern.permute.xlu1 %v557_v2  ;;  %v171_v27 = vrot.slane %v94_v6, %v620_v25  ;;  %v403_v28 = vrot.slane %v524_v10, %v620_v25 }
   0xb   :  { %548 = vset.pattern.permute.xlu0 %v556_v1  ;;  %43 = vperm.xlu1 %547, %v24_v17   ;;  %v81_v38 = vsub.s32 %v78_v37, %v597_v5 }
   0xc   :  { %107 = vperm.xlu0 %548, %v24_v17   ;;  %v172_v29 = vcombine.high %v171_v27, %v171_v27  ;;  %v404_v30 = vcombine.high %v403_v28, %v403_v28 }
   0xe   :  { %512 = vmatprep.subr.msk.mxu0 %vm198_vm0, %v172_v29  ;;  %526 = vmatprep.subr.msk.mxu1 %vm198_vm0, %v404_v30 }
   0xf   :  { %549 = vset.pattern.permute.xlu1 %v556_v1  ;;  %513 = vmatpush1.msk.msra.mxu0 %vm198_vm0, %v171_v27 }
  0x10   :  { %551 = vset.pattern.permute.xlu0 %v558_v11  ;;  %339 = vperm.xlu1 %549, %v329_v26   ;;  %v519_v11 = vld [vmem:[%s782_s0 + $0x40] sm:$0xff] }
  0x11   :  { %62 = vperm.xlu0 %551, %v24_v17   ;;  %527 = vmatpush1.msk.msra.mxu1 %vm198_vm0, %v403_v28 }
  0x14   :  { %550 = vset.pattern.permute.xlu1 %v557_v2 }
  0x15   :  { %38 = vperm.xlu1 %550, %v23_v31   ;;  %58 = vperm.xlu0 %551, %v23_v31  }
  0x19   :  { %552 = vset.pattern.permute.xlu1 %v556_v1  ;;  %554 = vset.pattern.permute.xlu0 %v561_v34 }
  0x1a   :  { %102 = vperm.xlu1 %552, %v23_v31   ;;  %181 = vperm.xlu0 %554, %v24_v17  }
  0x1e   :  { %334 = vperm.xlu1 %552, %v328_v32   ;;  %555 = vset.pattern.permute.xlu0 %v556_v1 }
  0x22   :  { %553 = vset.pattern.permute.xlu1 %v561_v34 }
  0x23   :  { %177 = vperm.xlu1 %553, %v23_v31  }
  0x27   :  { %185 = vperm.xlu1 %553, %v25_v3  }
  0x7d   :  { %v113_v39 = vpop.permute.xlu1 %112  ;;  %v49_v40 = vpop.permute.xlu0 %48 }
  0x7e   :  { %v82_v47 = vrot.slane %v49_v40, %v81_v38  ;;  %v55_v48 = vsub.f32 %v34_v41, %v49_v40  ;;  %v56_v49 = vsub.f32 %v35_v42, %v49_v40  ;;  %v314_v50 = vsub.f32 %v522_v43, %v49_v40 }
  0x7f   :  { %v313_v52 = vsub.f32 %v521_v45, %v49_v40  ;;  %v138_v58 = vmul.f32 %v610_v18, %v113_v39  ;;  %v139_v59 = vmul.f32 %v612_v19, %v113_v39 }
  0x80   :  { %v84_v51 = vsub.f32 %v75_v44, %v82_v47  ;;  %v323_v53 = vsub.f32 %v523_v46, %v82_v47 }
  0x81   :  { %v345_v54 = vpop.permute.xlu1 %344  ;;  %v659_v6 = vadd.f32 1.0, %v138_v58  ;;  %v661_v7 = vadd.f32 1.0, %v139_v59  ;;  %v517_v59 = vld [vmem:[%s782_s0 + $0x30] sm:$0xff] }
  0x82   :  { %v370_v55 = vmul.f32 %v614_v23, %v345_v54  ;;  %v371_v56 = vmul.f32 %v616_v24, %v345_v54  ;;  %v67_v57 = vpop.permute.xlu0 %66 }
  0x83   :  { %v91_v60 = vrot.slane %v67_v57, %v81_v38  ;;  %v74_v62 = vmul.f32 %v67_v57, %v56_v49  ;;  %v320_v63 = vmul.f32 %v314_v50, %v67_v57  ;;  %v73_v0 = vmul.f32 %v67_v57, %v55_v48 }
  0x84   :  { %v655_v61 = vadd.f32 1.0, %v370_v55  ;;  %v657_v1 = vadd.f32 1.0, %v371_v56  ;;  %v319_v4 = vmul.f32 %v313_v52, %v67_v57  ;;  %v30_v55 = vld [vmem:[%s782_s0] sm:$0xff]  ;;  %v31_v56 = vld [vmem:[%s782_s0 + $0x8] sm:$0xff] }
  0x85   :  { %v93_v2 = vmul.f32 %v91_v60, %v84_v51  ;;  %v324_v3 = vmul.f32 %v323_v53, %v91_v60  ;;  %v151_v17 = vmul.f32 %v661_v7, %v74_v62  ;;  %v150_v21 = vmul.f32 %v659_v6, %v73_v0  ;;  %v518_v60 = vld [vmem:[%s782_s0 + $0x38] sm:$0xff] }
  0x86   :  { %v44_v5 = vpop.permute.xlu1 %43  ;;  %v383_v20 = vmul.f32 %v657_v1, %v320_v63  ;;  %v382_v22 = vmul.f32 %v655_v61, %v319_v4 }
  0x87   :  { %v108_v10 = vpop.permute.xlu0 %107  ;;  %v153_v15 = vcombine.low %v93_v2, %v93_v2  ;;  %v385_v16 = vcombine.low %v324_v3, %v324_v3  ;;  %v53_v26 = vsub.f32 %v32_v8, %v44_v5  ;;  %v54_v27 = vsub.f32 %v33_v9, %v44_v5 }
  0x88   :  { %v136_v13 = vmul.f32 %v610_v18, %v108_v10  ;;  %v137_v14 = vmul.f32 %v612_v19, %v108_v10  ;;  %v311_v30 = vsub.f32 %v519_v11, %v44_v5  ;;  %v312_v31 = vsub.f32 %v520_v12, %v44_v5 }
  0x89   :  { %v160_v28 = vrot.slane %v153_v15, %v620_v25  ;;  %v392_v29 = vrot.slane %v385_v16, %v620_v25  ;;  %v20_v16 = vld [vmem:[%s784_s3] sm:$0xff] }
  0x8a   :  { %v683_v32 = vadd.f32 1.0, %v136_v13  ;;  %v685_v34 = vadd.f32 1.0, %v137_v14 }
  0x8b   :  { %v340_v35 = vpop.permute.xlu1 %339  ;;  %v175_v39 = vsel %vm173_vm1, %v151_v17, %v160_v28  ;;  %v406_v40 = vsel %vm173_vm1, %v383_v20, %v392_v29  ;;  %v161_v46 = vcombine.low %v160_v28, %v160_v28  ;;  %v393_v47 = vcombine.low %v392_v29, %v392_v29 }
  0x8c   :  { %v368_v36 = vmul.f32 %v614_v23, %v340_v35  ;;  %v369_v37 = vmul.f32 %v616_v24, %v340_v35  ;;  %v63_v38 = vpop.permute.xlu0 %62  ;;  %229 = vmatprep.subr.mxu0 %v175_v39  ;;  %437 = vmatprep.subr.mxu1 %v406_v40 }
  0x8d   :  { %v71_v41 = vmul.f32 %v63_v38, %v53_v26  ;;  %v72_v42 = vmul.f32 %v63_v38, %v54_v27  ;;  %v317_v43 = vmul.f32 %v311_v30, %v63_v38  ;;  %v318_v25 = vmul.f32 %v312_v31, %v63_v38 }
  0x8e   :  { %v691_v44 = vadd.f32 1.0, %v368_v36  ;;  %v693_v45 = vadd.f32 1.0, %v369_v37  ;;  %v174_v50 = vsel %vm173_vm1, %v150_v21, %v161_v46  ;;  %v405_v51 = vsel %vm173_vm1, %v382_v22, %v393_v47 }
  0x8f   :  { %v149_v48 = vmul.f32 %v685_v34, %v72_v42  ;;  %v148_v49 = vmul.f32 %v683_v32, %v71_v41  ;;  %230 = vmatpush1.msra.mxu0 %v174_v50  ;;  %438 = vmatpush1.msra.mxu1 %v405_v51 }
  0x90   :  { %v39_v52 = vpop.permute.xlu1 %38  ;;  %v381_v53 = vmul.f32 %v693_v45, %v318_v25  ;;  %v380_v54 = vmul.f32 %v691_v44, %v317_v43  ;;  %v59_v62 = vpop.permute.xlu0 %58 }
  0x91   :  { %231 = vmatprep.subr.mxu0 %v149_v48  ;;  %v51_v57 = vsub.f32 %v30_v55, %v39_v52  ;;  %v52_v58 = vsub.f32 %v31_v56, %v39_v52  ;;  %v309_v3 = vsub.f32 %v517_v59, %v39_v52  ;;  %v310_v4 = vsub.f32 %v518_v60, %v39_v52 }
  0x92   :  { %439 = vmatprep.subr.mxu1 %v381_v53  ;;  %232 = vmatpush1.msra.mxu0 %v148_v49 }
  0x93   :  { %440 = vmatpush1.msra.mxu1 %v380_v54  ;;  %v69_v5 = vmul.f32 %v59_v62, %v51_v57  ;;  %v70_v8 = vmul.f32 %v59_v62, %v52_v58 }
  0x95   :  { %v103_v63 = vpop.permute.xlu1 %102  ;;  %v182_v30 = vpop.permute.xlu0 %181 }
  0x96   :  { %v134_v0 = vmul.f32 %v610_v18, %v103_v63  ;;  %v135_v2 = vmul.f32 %v612_v19, %v103_v63  ;;  %v315_v18 = vmul.f32 %v309_v3, %v59_v62  ;;  %v316_v19 = vmul.f32 %v310_v4, %v59_v62 }
  0x98   :  { %v140_v9 = vadd.f32 1.0, %v134_v0  ;;  %v141_v10 = vadd.f32 1.0, %v135_v2 }
  0x99   :  { %v335_v11 = vpop.permute.xlu1 %334 }
  0x9a   :  { %v366_v12 = vmul.f32 %v614_v23, %v335_v11  ;;  %v367_v13 = vmul.f32 %v616_v24, %v335_v11  ;;  %v147_v14 = vmul.f32 %v141_v10, %v70_v8  ;;  %v146_v15 = vmul.f32 %v140_v9, %v69_v5  ;;  %v21_v23 = vld [vmem:[%s784_s3 + $0x8] sm:$0xff]  ;;  %v22_v24 = vld [vmem:[%s784_s3 + $0x10] sm:$0x3f] }
  0x9c   :  { %v372_v17 = vadd.f32 1.0, %v366_v12  ;;  %v373_v20 = vadd.f32 1.0, %v367_v13  ;;  %233 = vmatprep.subr.mxu0 %v147_v14 }
  0x9d   :  { %234 = vmatpush1.msra.mxu0 %v146_v15 }
  0x9e   :  { %514 = vmatmul.mubr.msk.f32.vlgmr.msra.gmra.mxu0 %vm188_vm2, %v20_v16  ;;  %v379_v21 = vmul.f32 %v373_v20, %v316_v19  ;;  %v378_v22 = vmul.f32 %v372_v17, %v315_v18  ;;  %v178_v26 = vpop.permute.xlu1 %177 }
  0x9f   :  { %273 = vmatprep.mubr.f32.mxu0 %v560_v33 }
  0xa0   :  { %441 = vmatprep.subr.mxu1 %v379_v21 }
  0xa1   :  { %442 = vmatpush1.msra.mxu1 %v378_v22 }
  0xa2   :  { %515 = vmatmul.mubr.msk.f32.gmra.mxu0 %vm188_vm2, %v21_v23  ;;  %528 = vmatmul.mubr.msk.f32.vlgmr.msra.gmra.mxu1 %vm188_vm2, %v20_v16  ;;  %v186_v41 = vpop.permute.xlu1 %185 }
  0xa3   :  { %279 = vmatprep.mubr.f32.mxu0 %v560_v33  ;;  %481 = vmatprep.mubr.f32.mxu1 %v560_v33 }
  0xa6   :  { %516 = vmatmul.mubr.msk.f32.gmra.mxu0 %vm188_vm2, %v22_v24  ;;  %529 = vmatmul.mubr.msk.f32.gmra.mxu1 %vm188_vm2, %v21_v23 }
  0xa7   :  { %487 = vmatprep.mubr.f32.mxu1 %v560_v33 }
  0xaa   :  { %530 = vmatmul.mubr.msk.f32.gmra.mxu1 %vm188_vm2, %v22_v24 }
 0x15e   :  { %v269_v27 = vpop.f32.mrf.mxu0 }
 0x15f   :  { %v270_v28 = vadd.f32 %v269_v27, %v178_v26 }
 0x160   :  { %v271_v29 = vpop.f32.mrf.mxu0 }
 0x161   :  { %v286_v31 = vmul.f32 %v270_v28, %v140_v9  ;;  %v272_v35 = vadd.f32 %v271_v29, %v178_v26 }
 0x162   :  { %v275_v36 = vpop.f32.mrf.mxu0  ;;  %v477_v37 = vpop.f32.mrf.mxu1 }
 0x163   :  { %292 = vst [vmem:[%s785_s5] sm:$0xff] %v286_v31  ;;  %v287_v38 = vmul.f32 %v272_v35, %v141_v10  ;;  %v276_v39 = vadd.f32 %v275_v36, %v182_v30  ;;  %v478_v40 = vadd.f32 %v477_v37, %v178_v26 }
 0x164   :  { %v277_v33 = vpop.f32.mrf.mxu0  ;;  %v479_v42 = vpop.f32.mrf.mxu1 }
 0x165   :  { %293 = vst [vmem:[%s785_s5 + $0x8] sm:$0xff] %v287_v38  ;;  %v288_v43 = vmul.f32 %v276_v39, %v683_v32  ;;  %v494_v25 = vmul.f32 %v478_v40, %v372_v17  ;;  %v278_v46 = vadd.f32 %v277_v33, %v182_v30  ;;  %v480_v47 = vadd.f32 %v479_v42, %v178_v26 }
 0x166   :  { %v281_v48 = vpop.f32.mrf.mxu0  ;;  %v483_v49 = vpop.f32.mrf.mxu1 }
 0x167   :  { %294 = vst [vmem:[%s785_s5 + $0x10] sm:$0xff] %v288_v43  ;;  %531 = vst [vmem:[%s785_s5 + $0x30] sm:$0xff] %v494_v25  ;;  %v289_v50 = vmul.f32 %v278_v46, %v685_v34  ;;  %v495_v51 = vmul.f32 %v480_v47, %v373_v20  ;;  %v282_v52 = vadd.f32 %v281_v48, %v186_v41 }
 0x168   :  { %v484_v53 = vadd.f32 %v483_v49, %v182_v30  ;;  %v283_v54 = vpop.f32.mrf.mxu0  ;;  %v485_v32 = vpop.f32.mrf.mxu1 }
 0x169   :  { %295 = vst [vmem:[%s785_s5 + $0x18] sm:$0xff] %v289_v50  ;;  %532 = vst [vmem:[%s785_s5 + $0x38] sm:$0xff] %v495_v51  ;;  %v290_v55 = vmul.f32 %v282_v52, %v659_v6  ;;  %v284_v57 = vadd.f32 %v283_v54, %v186_v41  ;;  %v486_v58 = vadd.f32 %v485_v32, %v182_v30 }
 0x16a   :  { %v496_v56 = vmul.f32 %v484_v53, %v691_v44  ;;  %v489_v34 = vpop.f32.mrf.mxu1 }
 0x16b   :  { %296 = vst [vmem:[%s785_s5 + $0x20] sm:$0x3f] %v290_v55  ;;  %v291_v59 = vmul.f32 %v284_v57, %v661_v7  ;;  %v497_v60 = vmul.f32 %v486_v58, %v693_v45  ;;  %v490_v62 = vadd.f32 %v489_v34, %v186_v41 }
 0x16c   :  { %533 = vst [vmem:[%s785_s5 + $0x40] sm:$0xff] %v496_v56  ;;  %v491_v63 = vpop.f32.mrf.mxu1 }
 0x16d   :  { %297 = vst [vmem:[%s785_s5 + $0x28] sm:$0x3f] %v291_v59  ;;  %534 = vst [vmem:[%s785_s5 + $0x48] sm:$0xff] %v497_v60  ;;  %v498_v6 = vmul.f32 %v490_v62, %v655_v61  ;;  %v492_v44 = vadd.f32 %v491_v63, %v186_v41 }
 0x16f   :  { %535 = vst [vmem:[%s785_s5 + $0x50] sm:$0x3f] %v498_v6  ;;  %v499_v7 = vmul.f32 %v492_v44, %v657_v1 }
 0x171   :  { %536 = vst [vmem:[%s785_s5 + $0x58] sm:$0x3f] %v499_v7 }

</bundles_post_ra>
